<compile_context>
chip_gen: v6e
topology: v6e:2x2x1
jax: 0.10.0
libtpu: 0.0.40
codegen_flags: <defaults>
</compile_context>

<pallas_src>
import functools

import jax
import jax.numpy as jnp
from jax.experimental import pallas as pl
from jax.experimental.pallas import tpu as pltpu

LANE = 128      # padded feature width for hidden/output layers (all widths <= LANE)
SUBLANE = 8     # f32 sublane count; input features padded to this
TM_MAX = 1024   # max batch tile (multiple of 8); ~0.7 MiB of VMEM per step


def _round_up(n, m):
    return ((n + m - 1) // m) * m


def _pad2d(x, rows, cols):
    return jnp.pad(x, ((0, rows - x.shape[0]), (0, cols - x.shape[1])))


def _mlp_kernel(x_ref, w_ref, b_ref, out_ref, h_ref, *,
                n_layers, in_pad, out_features):
    """x_ref: (TM, in_pad) f32, w_ref: (L, LANE, LANE) f32, b_ref: (L, 1, LANE) f32,
    out_ref: (TM, out_features) f32, h_ref: (TM, LANE) f32 VMEM scratch."""
    # Layer 0: consume the narrow input tile directly (no pad scratch, no
    # per-step zero store).  Padded input columns and padded weight rows are
    # zero, so the result is exact; lanes >= hidden_sizes[0] become
    # tanh(0 + 0) = 0 and stay zero through all remaining layers.
    h_ref[...] = jnp.tanh(
        jnp.dot(x_ref[...], w_ref[0, :in_pad, :],
                preferred_element_type=jnp.float32) + b_ref[0])

    # Remaining hidden layers + classifier layer, each a (LANE, LANE) slab.
    # Write back into the named scratch to bound live ranges at large TM.
    for l in range(1, n_layers):
        h_ref[...] = jnp.tanh(
            jnp.dot(h_ref[...], w_ref[l],
                    preferred_element_type=jnp.float32) + b_ref[l])

    # Only the first `out_features` lanes are meaningful; store just those.
    out_ref[...] = h_ref[:, :out_features]


def init_params(key, in_features, hidden_sizes, out_features):
    """Deterministic init mimicking nn.Linear default (uniform +-1/sqrt(fan_in)).
    Weights are stored as [in, out] (transposed from PyTorch's [out, in])."""
    sizes = [in_features] + list(hidden_sizes) + [out_features]
    params = []
    for i in range(len(sizes) - 1):
        key, kw, kb = jax.random.split(key, 3)
        bound = 1.0 / float(sizes[i]) ** 0.5
        w = jax.random.uniform(kw, (sizes[i], sizes[i + 1]),
                               minval=-bound, maxval=bound, dtype=jnp.float32)
        b = jax.random.uniform(kb, (sizes[i + 1],),
                               minval=-bound, maxval=bound, dtype=jnp.float32)
        params.append((w, b))
    return params


@functools.partial(jax.jit, static_argnames=("out_features",))
def thermal_comfort_forward(x, params, out_features):
    """x: [N, in_features] float32; params: list of (W [in,out], b [out])."""
    n, in_features = x.shape
    n_layers = len(params)

    # Contract: every layer width fits in one 128-lane slab.
    assert in_features <= LANE and out_features <= LANE
    for (w, b) in params:
        assert w.shape[0] <= LANE and w.shape[1] <= LANE

    # Batch tiling: large tiles amortize the ~0.35 us per-grid-step overhead;
    # when the batch fits in <= 2 * TM_MAX rows we split it into exactly two
    # grid steps so the "parallel" axis can use both v7x TensorCores.
    n_pad8 = _round_up(max(n, 1), SUBLANE)
    if n_pad8 <= 2 * TM_MAX:
        tm = max(SUBLANE, _round_up(pl.cdiv(n_pad8, 2), SUBLANE))
    else:
        tm = TM_MAX
    n_pad = _round_up(n_pad8, tm)
    grid = (n_pad // tm,)

    # Input features padded only to the sublane multiple (8), not 128 lanes:
    # tiny HBM input traffic, and the kernel runs layer 0 straight off it.
    in_pad = _round_up(in_features, SUBLANE)
    x_p = jnp.pad(x.astype(jnp.float32),
                  ((0, n_pad - n), (0, in_pad - in_features)))

    # Zero-padded weight / bias stacks.  The constant index_map keeps them
    # resident in VMEM across grid steps (fetched once, not re-DMA'd).
    w_stack = jnp.stack(
        [_pad2d(w.astype(jnp.float32), LANE, LANE) for (w, _) in params])
    b_stack = jnp.stack(
        [_pad2d(b.astype(jnp.float32)[None, :], 1, LANE) for (_, b) in params])

    kernel = functools.partial(
        _mlp_kernel, n_layers=n_layers, in_pad=in_pad, out_features=out_features)

    cost = pl.CostEstimate(
        flops=2 * n_pad * (in_pad * LANE + (n_layers - 1) * LANE * LANE),
        transcendentals=n_layers * LANE * n_pad,
        bytes_accessed=(n_pad * in_pad * 4
                        + n_pad * out_features * 4
                        + w_stack.size * 4 + b_stack.size * 4),
    )

    out = pl.pallas_call(
        kernel,
        out_shape=jax.ShapeDtypeStruct((n_pad, out_features), jnp.float32),
        grid_spec=pltpu.PrefetchScalarGridSpec(
            num_scalar_prefetch=0,
            grid=grid,
            in_specs=[
                # Input rows: last dim equals the full (sublane-padded) width.
                pl.BlockSpec((tm, in_pad), lambda i: (i, 0)),
                # Whole weight / bias stacks, same block for every grid step.
                pl.BlockSpec((n_layers, LANE, LANE), lambda i: (0, 0, 0)),
                pl.BlockSpec((n_layers, 1, LANE), lambda i: (0, 0, 0)),
            ],
            # Write only the useful output columns (narrow HBM writeback).
            out_specs=pl.BlockSpec((tm, out_features), lambda i: (i, 0)),
            scratch_shapes=[pltpu.VMEM((tm, LANE), jnp.float32)],
        ),
        compiler_params=pltpu.CompilerParams(
            dimension_semantics=("parallel",)),
        cost_estimate=cost,
    )(x_p, w_stack, b_stack)

    return out[:n]


def _reference_forward(x, params):
    h = x.astype(jnp.float32)
    for (w, b) in params:
        h = jnp.tanh(h @ w + b)
    return h


if __name__ == "__main__":
    # TODO(synk): adapt()/Adam/MSELoss training path and load_torch_model are
    # not part of forward(); only the inference pass is implemented as a kernel.
    in_features = 6       # environmental + personal conditions
    out_features = 1      # thermal sensation vote
    hidden_sizes = [32, 32]

    key = jax.random.PRNGKey(0)
    key, kp = jax.random.split(key)
    params = init_params(kp, in_features, hidden_sizes, out_features)

    # Small single-tile case (batch=8).
    key, kx = jax.random.split(key)
    x_small = jax.random.normal(kx, (8, in_features), dtype=jnp.float32)
    out_small = jax.block_until_ready(
        thermal_comfort_forward(x_small, params, out_features))
    ref_small = _reference_forward(x_small, params)
    assert out_small.shape == (8, out_features), out_small.shape
    assert jnp.allclose(out_small, ref_small, atol=1e-5, rtol=1e-5)

    # Mid-size case exercising the two-step tiling (tm = 264, grid = 2) and
    # batch padding.
    key, kx2 = jax.random.split(key)
    x_big = jax.random.normal(kx2, (520, in_features), dtype=jnp.float32)
    out_big = jax.block_until_ready(
        thermal_comfort_forward(x_big, params, out_features))
    ref_big = _reference_forward(x_big, params)
    assert out_big.shape == (520, out_features), out_big.shape
    assert jnp.allclose(out_big, ref_big, atol=1e-5, rtol=1e-5)

    print("KERNEL_OK")
</pallas_src>

<mosaic_0001>
module attributes {stable_mosaic.version = 11 : i64} {
  func.func @_mlp_kernel(%arg0: i32, %arg1: memref<8x8xf32, #tpu.memory_space<vmem>>, %arg2: memref<3x128x128xf32, #tpu.memory_space<vmem>>, %arg3: memref<3x1x128xf32, #tpu.memory_space<vmem>>, %arg4: memref<8x1xf32, #tpu.memory_space<vmem>>, %arg5: memref<8x128xf32, #tpu.memory_space<vmem>>) attributes {dimension_semantics = [#tpu.dimension_semantics<parallel>], iteration_bounds = array<i64: 1>, scalar_prefetch = 0 : i64, scratch_operands = 1 : i64, tpu.core_type = #tpu.core_type<tc>, window_params = [{transform_indices = @transform_0, window_bounds = array<i64: 8, 8>}, {pipeline_mode = #tpu.pipeline_mode<synchronous>, transform_indices = @transform_1, window_bounds = array<i64: 3, 128, 128>}, {pipeline_mode = #tpu.pipeline_mode<synchronous>, transform_indices = @transform_2, window_bounds = array<i64: 3, 1, 128>}, {transform_indices = @transform_3, window_bounds = array<i64: 8, 1>}]} {
    %c0 = arith.constant 0 : index
    %c0_0 = arith.constant 0 : index
    %0 = vector.load %arg1[%c0, %c0_0] : memref<8x8xf32, #tpu.memory_space<vmem>>, vector<8x8xf32>
    %c0_1 = arith.constant 0 : index
    %c0_2 = arith.constant 0 : index
    %c0_3 = arith.constant 0 : index
    %1 = vector.load %arg2[%c0_1, %c0_2, %c0_3] : memref<3x128x128xf32, #tpu.memory_space<vmem>>, vector<1x8x128xf32>
    %2 = vector.shape_cast %1 : vector<1x8x128xf32> to vector<8x128xf32>
    %cst = arith.constant dense<0.000000e+00> : vector<8x128xf32>
    %3 = tpu.matmul %0, %2, %cst {dimension_numbers = #tpu.dot_dimension_numbers<[1], [0], [0], [1], [0, 0, 1, 1], [], []>} : vector<8x8xf32>, vector<8x128xf32>, vector<8x128xf32> -> vector<8x128xf32>
    %c0_4 = arith.constant 0 : index
    %c0_5 = arith.constant 0 : index
    %c0_6 = arith.constant 0 : index
    %4 = vector.load %arg3[%c0_4, %c0_5, %c0_6] : memref<3x1x128xf32, #tpu.memory_space<vmem>>, vector<1x1x128xf32>
    %5 = vector.shape_cast %4 : vector<1x1x128xf32> to vector<1x128xf32>
    %6 = vector.broadcast %5 : vector<1x128xf32> to vector<8x128xf32>
    %7 = arith.addf %3, %6 : vector<8x128xf32>
    %8 = math.tanh %7 : vector<8x128xf32>
    %c0_7 = arith.constant 0 : index
    %c0_8 = arith.constant 0 : index
    %9 = vector.load %arg5[%c0_7, %c0_8] : memref<8x128xf32, #tpu.memory_space<vmem>>, vector<8x128xf32>
    tpu.vector_store %arg5[%c0_7, %c0_8], %8 {strides = array<i32>} : memref<8x128xf32, #tpu.memory_space<vmem>>, vector<8x128xf32>,
    %c0_9 = arith.constant 0 : index
    %c0_10 = arith.constant 0 : index
    %10 = vector.load %arg5[%c0_9, %c0_10] : memref<8x128xf32, #tpu.memory_space<vmem>>, vector<8x128xf32>
    %c1 = arith.constant 1 : index
    %c0_11 = arith.constant 0 : index
    %c0_12 = arith.constant 0 : index
    %11 = vector.load %arg2[%c1, %c0_11, %c0_12] : memref<3x128x128xf32, #tpu.memory_space<vmem>>, vector<1x128x128xf32>
    %12 = vector.shape_cast %11 : vector<1x128x128xf32> to vector<128x128xf32>
    %cst_13 = arith.constant dense<0.000000e+00> : vector<8x128xf32>
    %13 = tpu.matmul %10, %12, %cst_13 {dimension_numbers = #tpu.dot_dimension_numbers<[1], [0], [0], [1], [0, 0, 1, 1], [], []>} : vector<8x128xf32>, vector<128x128xf32>, vector<8x128xf32> -> vector<8x128xf32>
    %c1_14 = arith.constant 1 : index
    %c0_15 = arith.constant 0 : index
    %c0_16 = arith.constant 0 : index
    %14 = vector.load %arg3[%c1_14, %c0_15, %c0_16] : memref<3x1x128xf32, #tpu.memory_space<vmem>>, vector<1x1x128xf32>
    %15 = vector.shape_cast %14 : vector<1x1x128xf32> to vector<1x128xf32>
    %16 = vector.broadcast %15 : vector<1x128xf32> to vector<8x128xf32>
    %17 = arith.addf %13, %16 : vector<8x128xf32>
    %18 = math.tanh %17 : vector<8x128xf32>
    %c0_17 = arith.constant 0 : index
    %c0_18 = arith.constant 0 : index
    %19 = vector.load %arg5[%c0_17, %c0_18] : memref<8x128xf32, #tpu.memory_space<vmem>>, vector<8x128xf32>
    tpu.vector_store %arg5[%c0_17, %c0_18], %18 {strides = array<i32>} : memref<8x128xf32, #tpu.memory_space<vmem>>, vector<8x128xf32>,
    %c0_19 = arith.constant 0 : index
    %c0_20 = arith.constant 0 : index
    %20 = vector.load %arg5[%c0_19, %c0_20] : memref<8x128xf32, #tpu.memory_space<vmem>>, vector<8x128xf32>
    %c2 = arith.constant 2 : index
    %c0_21 = arith.constant 0 : index
    %c0_22 = arith.constant 0 : index
    %21 = vector.load %arg2[%c2, %c0_21, %c0_22] : memref<3x128x128xf32, #tpu.memory_space<vmem>>, vector<1x128x128xf32>
    %22 = vector.shape_cast %21 : vector<1x128x128xf32> to vector<128x128xf32>
    %cst_23 = arith.constant dense<0.000000e+00> : vector<8x128xf32>
    %23 = tpu.matmul %20, %22, %cst_23 {dimension_numbers = #tpu.dot_dimension_numbers<[1], [0], [0], [1], [0, 0, 1, 1], [], []>} : vector<8x128xf32>, vector<128x128xf32>, vector<8x128xf32> -> vector<8x128xf32>
    %c2_24 = arith.constant 2 : index
    %c0_25 = arith.constant 0 : index
    %c0_26 = arith.constant 0 : index
    %24 = vector.load %arg3[%c2_24, %c0_25, %c0_26] : memref<3x1x128xf32, #tpu.memory_space<vmem>>, vector<1x1x128xf32>
    %25 = vector.shape_cast %24 : vector<1x1x128xf32> to vector<1x128xf32>
    %26 = vector.broadcast %25 : vector<1x128xf32> to vector<8x128xf32>
    %27 = arith.addf %23, %26 : vector<8x128xf32>
    %28 = math.tanh %27 : vector<8x128xf32>
    %c0_27 = arith.constant 0 : index
    %c0_28 = arith.constant 0 : index
    %29 = vector.load %arg5[%c0_27, %c0_28] : memref<8x128xf32, #tpu.memory_space<vmem>>, vector<8x128xf32>
    tpu.vector_store %arg5[%c0_27, %c0_28], %28 {strides = array<i32>} : memref<8x128xf32, #tpu.memory_space<vmem>>, vector<8x128xf32>,
    %c0_29 = arith.constant 0 : index
    %c0_30 = arith.constant 0 : index
    %30 = vector.load %arg5[%c0_29, %c0_30] : memref<8x128xf32, #tpu.memory_space<vmem>>, vector<8x1xf32>
    %c0_31 = arith.constant 0 : index
    %c0_32 = arith.constant 0 : index
    %31 = vector.load %arg4[%c0_31, %c0_32] : memref<8x1xf32, #tpu.memory_space<vmem>>, vector<8x1xf32>
    tpu.vector_store %arg4[%c0_31, %c0_32], %30 {strides = array<i32>} : memref<8x1xf32, #tpu.memory_space<vmem>>, vector<8x1xf32>,
    return
  }
  func.func @transform_0(%arg0: i32) -> (i32, i32) {
    %c0_i32 = arith.constant 0 : i32
    %c0_i32_0 = arith.constant 0 : i32
    return %arg0, %c0_i32 : i32, i32
  }
  func.func @transform_1(%arg0: i32) -> (i32, i32, i32) {
    %c0_i32 = arith.constant 0 : i32
    %c0_i32_0 = arith.constant 0 : i32
    %c0_i32_1 = arith.constant 0 : i32
    %c0_i32_2 = arith.constant 0 : i32
    return %c0_i32, %c0_i32_0, %c0_i32_1 : i32, i32, i32
  }
  func.func @transform_2(%arg0: i32) -> (i32, i32, i32) {
    %c0_i32 = arith.constant 0 : i32
    %c0_i32_0 = arith.constant 0 : i32
    %c0_i32_1 = arith.constant 0 : i32
    %c0_i32_2 = arith.constant 0 : i32
    return %c0_i32, %c0_i32_0, %c0_i32_1 : i32, i32, i32
  }
  func.func @transform_3(%arg0: i32) -> (i32, i32) {
    %c0_i32 = arith.constant 0 : i32
    %c0_i32_0 = arith.constant 0 : i32
    return %arg0, %c0_i32 : i32, i32
  }
}

</mosaic_0001>

<bundles_post_ra>
// kernel: thermal_comfort_forward.1
= control target key start
LH: loop header
LB: loop body
LE: loop exit
PB: predicated region body
PF: predicated region fallthrough
CT: control target
= control target key end

     0   :  { %vm23_vm0 = vcmask 64512   ;;  %v459_v0 = vmov 0.0   ;;  %vm460_vm1 = vmmov 0   ;;  %vm296_vm2 = vcmask 7168   ;;  %s634_s1 = inlined_call_operand.vmem [shape: f32[3,128,128], index: 1, kind: input, shape index: {}]   ;;  %s635_s0 = inlined_call_operand.vmem [shape: f32[8,8], index: 0, kind: input, shape index: {}]   ;;  %s636_s2 = inlined_call_operand.vmem [shape: f32[3,1,128], index: 2, kind: input, shape index: {}]   ;;  %s637_s3 = inlined_call_operand.vmem [shape: f32[8,1], index: 3, kind: output, shape index: {}]  }
   0x1   :  { %376 = vmatprep.subr.mxu0 %v459_v0  ;;  %v15_v1 = vld [vmem:[%s634_s1] sm:$0xff]  ;;  %378 = vmatprep.mubr.msk.f32.mxu0 %vm460_vm1, %v459_v0  ;;  %v319_v3 = vld [vmem:[%s634_s1 + $0xf8] sm:$0xff]  ;;  %v318_v4 = vld [vmem:[%s634_s1 + $0xf0] sm:$0xff] }
   0x2   :  { %v14_v2 = vld [vmem:[%s635_s0] sm:$0xff]  ;;  %377 = vmatpush3.msra.mxu0 %v15_v1  ;;  %381 = vmatprep.subr.mxu1 %v459_v0  ;;  %v317_v5 = vld [vmem:[%s634_s1 + $0xe8] sm:$0xff]  ;;  %v315_v7 = vld [vmem:[%s634_s1 + $0xd8] sm:$0xff] }
   0x3   :  { %379 = vmatmul.mubr.msk.f32.vlgmr.msra.gmra.mxu0 %vm23_vm0, %v14_v2  ;;  %382 = vmatpush3.msra.mxu1 %v319_v3  ;;  %v316_v6 = vld [vmem:[%s634_s1 + $0xe0] sm:$0xff]  ;;  %v314_v8 = vld [vmem:[%s634_s1 + $0xd0] sm:$0xff]  ;;  %v313_v9 = vld [vmem:[%s634_s1 + $0xc8] sm:$0xff] }
   0x4   :  { %383 = vmatprep.subr.mxu1 %v459_v0  ;;  %413 = vmatprep.mubr.msk.f32.mxu1 %vm460_vm1, %v459_v0  ;;  %v312_v10 = vld [vmem:[%s634_s1 + $0xc0] sm:$0xff]  ;;  %v311_v11 = vld [vmem:[%s634_s1 + $0xb8] sm:$0xff]  ;;  %v310_v12 = vld [vmem:[%s634_s1 + $0xb0] sm:$0xff] }
   0x5   :  { %384 = vmatpush3.msra.mxu1 %v318_v4  ;;  %416 = vmatprep.subr.mxu0 %v459_v0  ;;  %v309_v13 = vld [vmem:[%s634_s1 + $0xa8] sm:$0xff]  ;;  %v308_v14 = vld [vmem:[%s634_s1 + $0xa0] sm:$0xff]  ;;  %v307_v15 = vld [vmem:[%s634_s1 + $0x98] sm:$0xff] }
   0x6   :  { %385 = vmatprep.subr.mxu1 %v459_v0  ;;  %448 = vmatprep.mubr.msk.f32.mxu0 %vm460_vm1, %v459_v0  ;;  %v306_v16 = vld [vmem:[%s634_s1 + $0x90] sm:$0xff]  ;;  %v305_v17 = vld [vmem:[%s634_s1 + $0x88] sm:$0xff]  ;;  %v304_v18 = vld [vmem:[%s634_s1 + $0x80] sm:$0xff] }
   0x7   :  { %386 = vmatpush3.msra.mxu1 %v317_v5  ;;  %v337_v19 = vld [vmem:[%s634_s1 + $0x178] sm:$0xff]  ;;  %v336_v20 = vld [vmem:[%s634_s1 + $0x170] sm:$0xff]  ;;  %v335_v21 = vld [vmem:[%s634_s1 + $0x168] sm:$0xff] }
   0x8   :  { %387 = vmatprep.subr.mxu1 %v459_v0  ;;  %417 = vmatpush3.msra.mxu0 %v337_v19  ;;  %v334_v22 = vld [vmem:[%s634_s1 + $0x160] sm:$0xff]  ;;  %v333_v23 = vld [vmem:[%s634_s1 + $0x158] sm:$0xff]  ;;  %v332_v24 = vld [vmem:[%s634_s1 + $0x150] sm:$0xff] }
   0x9   :  { %388 = vmatpush3.msra.mxu1 %v316_v6  ;;  %418 = vmatprep.subr.mxu0 %v459_v0  ;;  %v331_v25 = vld [vmem:[%s634_s1 + $0x148] sm:$0xff]  ;;  %v302_v26 = vld [vmem:[%s636_s2] ss:$0 sm:$0xff]  ;;  %v329_v32 = vld [vmem:[%s634_s1 + $0x138] sm:$0xff] }
   0xa   :  { %389 = vmatprep.subr.mxu1 %v459_v0  ;;  %419 = vmatpush3.msra.mxu0 %v336_v20  ;;  %v330_v31 = vld [vmem:[%s634_s1 + $0x140] sm:$0xff]  ;;  %v328_v33 = vld [vmem:[%s634_s1 + $0x130] sm:$0xff]  ;;  %v327_v34 = vld [vmem:[%s634_s1 + $0x128] sm:$0xff] }
   0xb   :  { %390 = vmatpush3.msra.mxu1 %v315_v7  ;;  %420 = vmatprep.subr.mxu0 %v459_v0  ;;  %v326_v35 = vld [vmem:[%s634_s1 + $0x120] sm:$0xff]  ;;  %v325_v36 = vld [vmem:[%s634_s1 + $0x118] sm:$0xff]  ;;  %v324_v37 = vld [vmem:[%s634_s1 + $0x110] sm:$0xff] }
   0xc   :  { %391 = vmatprep.subr.mxu1 %v459_v0  ;;  %421 = vmatpush3.msra.mxu0 %v335_v21  ;;  %v323_v38 = vld [vmem:[%s634_s1 + $0x108] sm:$0xff]  ;;  %v322_v39 = vld [vmem:[%s634_s1 + $0x100] sm:$0xff] }
   0xd   :  { %392 = vmatpush3.msra.mxu1 %v314_v8  ;;  %422 = vmatprep.subr.mxu0 %v459_v0  ;;  %v321_v40 = vld [vmem:[%s636_s2 + $0x1] ss:$0 sm:$0xff]  ;;  %v339_v45 = vld [vmem:[%s636_s2 + $0x2] ss:$0 sm:$0xff] }
   0xe   :  { %393 = vmatprep.subr.mxu1 %v459_v0  ;;  %423 = vmatpush3.msra.mxu0 %v334_v22 }
   0xf   :  { %394 = vmatpush3.msra.mxu1 %v313_v9  ;;  %424 = vmatprep.subr.mxu0 %v459_v0 }
  0x10   :  { %395 = vmatprep.subr.mxu1 %v459_v0  ;;  %425 = vmatpush3.msra.mxu0 %v333_v23 }
  0x11   :  { %396 = vmatpush3.msra.mxu1 %v312_v10  ;;  %426 = vmatprep.subr.mxu0 %v459_v0 }
  0x12   :  { %397 = vmatprep.subr.mxu1 %v459_v0  ;;  %427 = vmatpush3.msra.mxu0 %v332_v24 }
  0x13   :  { %398 = vmatpush3.msra.mxu1 %v311_v11  ;;  %428 = vmatprep.subr.mxu0 %v459_v0 }
  0x14   :  { %399 = vmatprep.subr.mxu1 %v459_v0  ;;  %429 = vmatpush3.msra.mxu0 %v331_v25 }
  0x15   :  { %400 = vmatpush3.msra.mxu1 %v310_v12  ;;  %430 = vmatprep.subr.mxu0 %v459_v0 }
  0x16   :  { %401 = vmatprep.subr.mxu1 %v459_v0  ;;  %431 = vmatpush3.msra.mxu0 %v330_v31 }
  0x17   :  { %402 = vmatpush3.msra.mxu1 %v309_v13  ;;  %432 = vmatprep.subr.mxu0 %v459_v0 }
  0x18   :  { %403 = vmatprep.subr.mxu1 %v459_v0  ;;  %433 = vmatpush3.msra.mxu0 %v329_v32 }
  0x19   :  { %404 = vmatpush3.msra.mxu1 %v308_v14  ;;  %434 = vmatprep.subr.mxu0 %v459_v0 }
  0x1a   :  { %405 = vmatprep.subr.mxu1 %v459_v0  ;;  %435 = vmatpush3.msra.mxu0 %v328_v33 }
  0x1b   :  { %406 = vmatpush3.msra.mxu1 %v307_v15  ;;  %436 = vmatprep.subr.mxu0 %v459_v0 }
  0x1c   :  { %407 = vmatprep.subr.mxu1 %v459_v0  ;;  %437 = vmatpush3.msra.mxu0 %v327_v34 }
  0x1d   :  { %408 = vmatpush3.msra.mxu1 %v306_v16  ;;  %438 = vmatprep.subr.mxu0 %v459_v0 }
  0x1e   :  { %409 = vmatprep.subr.mxu1 %v459_v0  ;;  %439 = vmatpush3.msra.mxu0 %v326_v35 }
  0x1f   :  { %410 = vmatpush3.msra.mxu1 %v305_v17  ;;  %440 = vmatprep.subr.mxu0 %v459_v0 }
  0x20   :  { %411 = vmatprep.subr.mxu1 %v459_v0  ;;  %441 = vmatpush3.msra.mxu0 %v325_v36 }
  0x21   :  { %412 = vmatpush3.msra.mxu1 %v304_v18  ;;  %442 = vmatprep.subr.mxu0 %v459_v0 }
  0x22   :  { %443 = vmatpush3.msra.mxu0 %v324_v37 }
  0x23   :  { %444 = vmatprep.subr.mxu0 %v459_v0 }
  0x24   :  { %445 = vmatpush3.msra.mxu0 %v323_v38 }
  0x25   :  { %446 = vmatprep.subr.mxu0 %v459_v0 }
  0x26   :  { %447 = vmatpush3.msra.mxu0 %v322_v39 }
  0xc3   :  { %v93_v27 = vpop.f32.mrf.mxu0 }
  0xc4   :  { %v94_v28 = vadd.f32 %v302_v26, %v93_v27 }
  0xc5   :  { %v380_v29 = vpop.f32.mrf.mxu0 }
  0xc6   :  { %453 = vtanh.f32 %v94_v28 }
  0xd3   :  { %v454_v30 = vpop.eup %453 }
  0xd4   :  { %414 = vmatmul.mubr.f32.vlgmr.msra.gmra.mxu1 %v454_v30 }
 0x194   :  { %v191_v41 = vpop.f32.mrf.mxu1 }
 0x195   :  { %v192_v42 = vadd.f32 %v321_v40, %v191_v41 }
 0x196   :  { %v415_v43 = vpop.f32.mrf.mxu1 }
 0x197   :  { %455 = vtanh.f32 %v192_v42 }
 0x1a4   :  { %v456_v44 = vpop.eup %455 }
 0x1a5   :  { %449 = vmatmul.mubr.f32.vlgmr.msra.gmra.mxu0 %v456_v44 }
 0x265   :  { %v289_v46 = vpop.f32.mrf.mxu0 }
 0x266   :  { %v290_v47 = vadd.f32 %v339_v45, %v289_v46 }
 0x267   :  { %v450_v48 = vpop.f32.mrf.mxu0 }
 0x268   :  { %457 = vtanh.f32 %v290_v47 }
 0x275   :  { %v458_v49 = vpop.eup %457 }
 0x276   :  { %297 = vst.msk [vmem:[%s637_s3] sm:$0xff] %vm296_vm2, %v458_v49 }

</bundles_post_ra>
